<compile_context>
chip_gen: v5e
topology: v5e:2x2
jax: 0.10.0
libtpu: 0.0.40
codegen_flags: <defaults>
</compile_context>

<pallas_src>
import functools

import jax
import jax.numpy as jnp
from jax.experimental import pallas as pl
from jax.experimental.pallas import tpu as pltpu


LEAKY_SLOPE = 0.01  # PyTorch nn.LeakyReLU default negative_slope
LANE = 128          # TPU lane width; feature dims padded to multiples of this


def _round_up(x, m):
    return (x + m - 1) // m * m


def _mlp_kernel(use_tanh, n_layers, mxu_dtype, x_ref, *refs):
    """Fused MLP forward for one batch tile.

    refs = (w0, b0, w1, b1, ..., w_{L-1}, b_{L-1}, out_ref)
    Weights arrive already padded/lane-dense and in `mxu_dtype`; biases are f32.
    """
    out_ref = refs[-1]
    wb = refs[:-1]

    h = x_ref[...].astype(jnp.float32)
    for l in range(n_layers):
        w = wb[2 * l][...]                 # (in_p, out_p), mxu_dtype
        b = wb[2 * l + 1][...]             # (1, out_p), f32
        # MXU matmul in bf16 (or f32) with f32 accumulation.
        h = jnp.dot(h.astype(mxu_dtype), w, preferred_element_type=jnp.float32)
        h = h + b.astype(jnp.float32)
        if l < n_layers - 1:
            # LeakyReLU after every layer except the last (f32 on the VPU).
            h = jnp.where(h > 0, h, LEAKY_SLOPE * h)
    if use_tanh:
        h = jnp.tanh(h)
    out_ref[...] = h.astype(out_ref.dtype)


def basic_fully_connected_net(x, weights, biases, *, use_tanh=False, use_bn=False,
                              batch_tile=256, mxu_dtype=jnp.bfloat16):
    """Run the fused MLP Pallas kernel.

    x:       (batch, dim) float32
    weights: list of (in_features, out_features) arrays (pre-transposed vs PyTorch)
    biases:  list of (out_features,) arrays
    """
    assert not use_bn, "use_bn=True (BatchNorm1d) is not implemented"
    batch, dim = x.shape
    n_layers = len(weights)
    out_dim = weights[-1].shape[1]

    # ---- pad every feature dim to a lane-dense multiple of 128 ----
    in_dims = [w.shape[0] for w in weights]
    out_dims = [w.shape[1] for w in weights]
    in_pad = [_round_up(d, LANE) for d in in_dims]
    out_pad = [_round_up(d, LANE) for d in out_dims]
    dim_p = in_pad[0]
    out_dim_p = out_pad[-1]

    w_args, b_args = [], []
    for w, b, ip, op in zip(weights, biases, in_pad, out_pad):
        wp = jnp.zeros((ip, op), jnp.float32).at[: w.shape[0], : w.shape[1]].set(w)
        w_args.append(wp.astype(mxu_dtype))                      # bf16 weights in VMEM
        bp = jnp.zeros((1, op), jnp.float32).at[0, : b.shape[0]].set(b)
        b_args.append(bp)

    # ---- batch tiling (8-aligned, clamped to the padded batch) ----
    batch_tile = max(8, min(int(batch_tile), _round_up(batch, 8)))
    batch_tile = _round_up(batch_tile, 8)
    batch_p = _round_up(batch, batch_tile)

    x_p = x
    if (batch_p, dim_p) != (batch, dim):
        x_p = jnp.zeros((batch_p, dim_p), x.dtype).at[:batch, :dim].set(x)

    grid = (batch_p // batch_tile,)

    kernel = functools.partial(_mlp_kernel, use_tanh, n_layers, mxu_dtype)

    # x is streamed/tile-pipelined over the batch; weights & biases are
    # grid-invariant, so keep them whole in VMEM (no double-buffering).
    in_specs = [pl.BlockSpec((batch_tile, dim_p), lambda i: (i, 0))]
    wb_args = []
    for w, b in zip(w_args, b_args):
        in_specs.append(pl.BlockSpec(memory_space=pltpu.MemorySpace.VMEM))
        in_specs.append(pl.BlockSpec(memory_space=pltpu.MemorySpace.VMEM))
        wb_args.extend([w, b])

    out_specs = pl.BlockSpec((batch_tile, out_dim_p), lambda i: (i, 0))

    # ---- explicit VMEM budget: resident weights + double-buffered x/out tiles ----
    w_bytes = sum(ip * op * jnp.dtype(mxu_dtype).itemsize
                  for ip, op in zip(in_pad, out_pad))
    b_bytes = sum(op * 4 for op in out_pad)
    io_bytes = 2 * batch_tile * (dim_p + out_dim_p) * 4          # double-buffered tiles
    tmp_bytes = 4 * batch_tile * max(out_pad) * 4                # in-kernel temporaries
    vmem_limit = int(1.3 * (w_bytes + b_bytes + io_bytes + tmp_bytes)) + (4 << 20)
    vmem_limit = max(16 << 20, min(vmem_limit, 64 << 20))        # <= v7x physical VMEM

    y_pad = pl.pallas_call(
        kernel,
        out_shape=jax.ShapeDtypeStruct((batch_p, out_dim_p), x.dtype),
        grid_spec=pltpu.PrefetchScalarGridSpec(
            num_scalar_prefetch=0,
            grid=grid,
            in_specs=in_specs,
            out_specs=out_specs,
        ),
        compiler_params=pltpu.CompilerParams(
            dimension_semantics=("parallel",),
            vmem_limit_bytes=vmem_limit,
        ),
    )(x_p, *wb_args)

    return y_pad[:batch, :out_dim]


def init_params(key, dim, depth, hidden_dim, out_dim=None):
    """Deterministic init matching PyTorch layer shapes (weights pre-transposed)."""
    out_dim = dim if out_dim is None else out_dim
    layer_dims = [(dim, hidden_dim)]
    for _ in range(depth):
        layer_dims.append((hidden_dim, hidden_dim))
    layer_dims.append((hidden_dim, out_dim))

    weights, biases = [], []
    for (fan_in, fan_out) in layer_dims:
        key, wk, bk = jax.random.split(key, 3)
        bound = 1.0 / jnp.sqrt(fan_in)
        # PyTorch nn.Linear default: U(-1/sqrt(fan_in), 1/sqrt(fan_in)) for w and b.
        w = jax.random.uniform(wk, (fan_in, fan_out), jnp.float32, -bound, bound)
        b = jax.random.uniform(bk, (fan_out,), jnp.float32, -bound, bound)
        weights.append(w)
        biases.append(b)
    return weights, biases


def reference_forward(x, weights, biases, use_tanh=False):
    h = x
    n = len(weights)
    for l, (w, b) in enumerate(zip(weights, biases)):
        h = h @ w + b
        if l < n - 1:
            h = jnp.where(h > 0, h, LEAKY_SLOPE * h)
    if use_tanh:
        h = jnp.tanh(h)
    return h


if __name__ == "__main__":
    # Small shapes consistent with the module's forward: (batch, dim) input.
    batch, dim, depth, hidden_dim, out_dim = 16, 16, 2, 32, 16

    key = jax.random.PRNGKey(0)
    key, xk = jax.random.split(key)
    x = jax.random.normal(xk, (batch, dim), jnp.float32)
    weights, biases = init_params(key, dim, depth, hidden_dim, out_dim=out_dim)

    ref = reference_forward(x, weights, biases, use_tanh=False)

    # Exact f32-MXU path: must match the reference tightly.
    out_f32 = basic_fully_connected_net(x, weights, biases, use_tanh=False,
                                        mxu_dtype=jnp.float32)
    out_f32 = jax.block_until_ready(out_f32)
    assert out_f32.shape == (batch, out_dim)
    assert jnp.allclose(out_f32, ref, atol=1e-5, rtol=1e-5), "f32 path mismatch vs reference"

    # Default perf path (bf16 MXU operands): looser tolerance.
    out_bf16 = basic_fully_connected_net(x, weights, biases, use_tanh=False)
    out_bf16 = jax.block_until_ready(out_bf16)
    assert out_bf16.shape == (batch, out_dim)
    assert jnp.allclose(out_bf16, ref, atol=5e-2, rtol=5e-2), "bf16 path mismatch vs reference"

    # use_tanh=True path.
    out_tanh = basic_fully_connected_net(x, weights, biases, use_tanh=True,
                                         mxu_dtype=jnp.float32)
    out_tanh = jax.block_until_ready(out_tanh)
    ref_tanh = reference_forward(x, weights, biases, use_tanh=True)
    assert jnp.allclose(out_tanh, ref_tanh, atol=1e-5, rtol=1e-5), "tanh path mismatch"

    print("KERNEL_OK")
</pallas_src>

<mosaic_0001>
module attributes {stable_mosaic.version = 11 : i64} {
  func.func @_mlp_kernel(%arg0: i32, %arg1: memref<16x128xf32, #tpu.memory_space<vmem>>, %arg2: memref<128x128xf32, #tpu.memory_space<vmem>>, %arg3: memref<1x128xf32, #tpu.memory_space<vmem>>, %arg4: memref<128x128xf32, #tpu.memory_space<vmem>>, %arg5: memref<1x128xf32, #tpu.memory_space<vmem>>, %arg6: memref<128x128xf32, #tpu.memory_space<vmem>>, %arg7: memref<1x128xf32, #tpu.memory_space<vmem>>, %arg8: memref<128x128xf32, #tpu.memory_space<vmem>>, %arg9: memref<1x128xf32, #tpu.memory_space<vmem>>, %arg10: memref<16x128xf32, #tpu.memory_space<vmem>>) attributes {dimension_semantics = [#tpu.dimension_semantics<parallel>], iteration_bounds = array<i64: 1>, scalar_prefetch = 0 : i64, scratch_operands = 0 : i64, tpu.core_type = #tpu.core_type<tc>, window_params = [{transform_indices = @transform_0, window_bounds = array<i64: 16, 128>}, {pipeline_mode = #tpu.pipeline_mode<synchronous>, transform_indices = @transform_1, window_bounds = array<i64: 128, 128>}, {pipeline_mode = #tpu.pipeline_mode<synchronous>, transform_indices = @transform_2, window_bounds = array<i64: 1, 128>}, {pipeline_mode = #tpu.pipeline_mode<synchronous>, transform_indices = @transform_3, window_bounds = array<i64: 128, 128>}, {pipeline_mode = #tpu.pipeline_mode<synchronous>, transform_indices = @transform_4, window_bounds = array<i64: 1, 128>}, {pipeline_mode = #tpu.pipeline_mode<synchronous>, transform_indices = @transform_5, window_bounds = array<i64: 128, 128>}, {pipeline_mode = #tpu.pipeline_mode<synchronous>, transform_indices = @transform_6, window_bounds = array<i64: 1, 128>}, {pipeline_mode = #tpu.pipeline_mode<synchronous>, transform_indices = @transform_7, window_bounds = array<i64: 128, 128>}, {pipeline_mode = #tpu.pipeline_mode<synchronous>, transform_indices = @transform_8, window_bounds = array<i64: 1, 128>}, {transform_indices = @transform_9, window_bounds = array<i64: 16, 128>}]} {
    %c0 = arith.constant 0 : index
    %c0_0 = arith.constant 0 : index
    %0 = vector.load %arg1[%c0, %c0_0] : memref<16x128xf32, #tpu.memory_space<vmem>>, vector<16x128xf32>
    %c0_1 = arith.constant 0 : index
    %c0_2 = arith.constant 0 : index
    %1 = vector.load %arg2[%c0_1, %c0_2] : memref<128x128xf32, #tpu.memory_space<vmem>>, vector<128x128xf32>
    %c0_3 = arith.constant 0 : index
    %c0_4 = arith.constant 0 : index
    %2 = vector.load %arg3[%c0_3, %c0_4] : memref<1x128xf32, #tpu.memory_space<vmem>>, vector<1x128xf32>
    %cst = arith.constant dense<0.000000e+00> : vector<16x128xf32>
    %3 = tpu.matmul %0, %1, %cst {dimension_numbers = #tpu.dot_dimension_numbers<[1], [0], [0], [1], [0, 0, 1, 1], [], []>} : vector<16x128xf32>, vector<128x128xf32>, vector<16x128xf32> -> vector<16x128xf32>
    %4 = vector.broadcast %2 : vector<1x128xf32> to vector<16x128xf32>
    %5 = arith.addf %3, %4 : vector<16x128xf32>
    %cst_5 = arith.constant 0.000000e+00 : f32
    %6 = vector.broadcast %cst_5 : f32 to vector<16x128xf32>
    %7 = arith.cmpf ogt, %5, %6 : vector<16x128xf32>
    %cst_6 = arith.constant 0.00999999977 : f32
    %8 = vector.broadcast %cst_6 : f32 to vector<16x128xf32>
    %9 = arith.mulf %8, %5 : vector<16x128xf32>
    %10 = arith.select %7, %5, %9 : vector<16x128xi1>, vector<16x128xf32>
    %c0_7 = arith.constant 0 : index
    %c0_8 = arith.constant 0 : index
    %11 = vector.load %arg4[%c0_7, %c0_8] : memref<128x128xf32, #tpu.memory_space<vmem>>, vector<128x128xf32>
    %c0_9 = arith.constant 0 : index
    %c0_10 = arith.constant 0 : index
    %12 = vector.load %arg5[%c0_9, %c0_10] : memref<1x128xf32, #tpu.memory_space<vmem>>, vector<1x128xf32>
    %cst_11 = arith.constant dense<0.000000e+00> : vector<16x128xf32>
    %13 = tpu.matmul %10, %11, %cst_11 {dimension_numbers = #tpu.dot_dimension_numbers<[1], [0], [0], [1], [0, 0, 1, 1], [], []>} : vector<16x128xf32>, vector<128x128xf32>, vector<16x128xf32> -> vector<16x128xf32>
    %14 = vector.broadcast %12 : vector<1x128xf32> to vector<16x128xf32>
    %15 = arith.addf %13, %14 : vector<16x128xf32>
    %cst_12 = arith.constant 0.000000e+00 : f32
    %16 = vector.broadcast %cst_12 : f32 to vector<16x128xf32>
    %17 = arith.cmpf ogt, %15, %16 : vector<16x128xf32>
    %cst_13 = arith.constant 0.00999999977 : f32
    %18 = vector.broadcast %cst_13 : f32 to vector<16x128xf32>
    %19 = arith.mulf %18, %15 : vector<16x128xf32>
    %20 = arith.select %17, %15, %19 : vector<16x128xi1>, vector<16x128xf32>
    %c0_14 = arith.constant 0 : index
    %c0_15 = arith.constant 0 : index
    %21 = vector.load %arg6[%c0_14, %c0_15] : memref<128x128xf32, #tpu.memory_space<vmem>>, vector<128x128xf32>
    %c0_16 = arith.constant 0 : index
    %c0_17 = arith.constant 0 : index
    %22 = vector.load %arg7[%c0_16, %c0_17] : memref<1x128xf32, #tpu.memory_space<vmem>>, vector<1x128xf32>
    %cst_18 = arith.constant dense<0.000000e+00> : vector<16x128xf32>
    %23 = tpu.matmul %20, %21, %cst_18 {dimension_numbers = #tpu.dot_dimension_numbers<[1], [0], [0], [1], [0, 0, 1, 1], [], []>} : vector<16x128xf32>, vector<128x128xf32>, vector<16x128xf32> -> vector<16x128xf32>
    %24 = vector.broadcast %22 : vector<1x128xf32> to vector<16x128xf32>
    %25 = arith.addf %23, %24 : vector<16x128xf32>
    %cst_19 = arith.constant 0.000000e+00 : f32
    %26 = vector.broadcast %cst_19 : f32 to vector<16x128xf32>
    %27 = arith.cmpf ogt, %25, %26 : vector<16x128xf32>
    %cst_20 = arith.constant 0.00999999977 : f32
    %28 = vector.broadcast %cst_20 : f32 to vector<16x128xf32>
    %29 = arith.mulf %28, %25 : vector<16x128xf32>
    %30 = arith.select %27, %25, %29 : vector<16x128xi1>, vector<16x128xf32>
    %c0_21 = arith.constant 0 : index
    %c0_22 = arith.constant 0 : index
    %31 = vector.load %arg8[%c0_21, %c0_22] : memref<128x128xf32, #tpu.memory_space<vmem>>, vector<128x128xf32>
    %c0_23 = arith.constant 0 : index
    %c0_24 = arith.constant 0 : index
    %32 = vector.load %arg9[%c0_23, %c0_24] : memref<1x128xf32, #tpu.memory_space<vmem>>, vector<1x128xf32>
    %cst_25 = arith.constant dense<0.000000e+00> : vector<16x128xf32>
    %33 = tpu.matmul %30, %31, %cst_25 {dimension_numbers = #tpu.dot_dimension_numbers<[1], [0], [0], [1], [0, 0, 1, 1], [], []>} : vector<16x128xf32>, vector<128x128xf32>, vector<16x128xf32> -> vector<16x128xf32>
    %34 = vector.broadcast %32 : vector<1x128xf32> to vector<16x128xf32>
    %35 = arith.addf %33, %34 : vector<16x128xf32>
    %c0_26 = arith.constant 0 : index
    %c0_27 = arith.constant 0 : index
    %36 = vector.load %arg10[%c0_26, %c0_27] : memref<16x128xf32, #tpu.memory_space<vmem>>, vector<16x128xf32>
    tpu.vector_store %arg10[%c0_26, %c0_27], %35 {strides = array<i32>} : memref<16x128xf32, #tpu.memory_space<vmem>>, vector<16x128xf32>,
    return
  }
  func.func @transform_0(%arg0: i32) -> (i32, i32) {
    %c0_i32 = arith.constant 0 : i32
    %c0_i32_0 = arith.constant 0 : i32
    return %arg0, %c0_i32 : i32, i32
  }
  func.func @transform_1(%arg0: i32) -> (i32, i32) {
    %c0_i32 = arith.constant 0 : i32
    %c0_i32_0 = arith.constant 0 : i32
    %c0_i32_1 = arith.constant 0 : i32
    return %c0_i32, %c0_i32_0 : i32, i32
  }
  func.func @transform_2(%arg0: i32) -> (i32, i32) {
    %c0_i32 = arith.constant 0 : i32
    %c0_i32_0 = arith.constant 0 : i32
    %c0_i32_1 = arith.constant 0 : i32
    return %c0_i32, %c0_i32_0 : i32, i32
  }
  func.func @transform_3(%arg0: i32) -> (i32, i32) {
    %c0_i32 = arith.constant 0 : i32
    %c0_i32_0 = arith.constant 0 : i32
    %c0_i32_1 = arith.constant 0 : i32
    return %c0_i32, %c0_i32_0 : i32, i32
  }
  func.func @transform_4(%arg0: i32) -> (i32, i32) {
    %c0_i32 = arith.constant 0 : i32
    %c0_i32_0 = arith.constant 0 : i32
    %c0_i32_1 = arith.constant 0 : i32
    return %c0_i32, %c0_i32_0 : i32, i32
  }
  func.func @transform_5(%arg0: i32) -> (i32, i32) {
    %c0_i32 = arith.constant 0 : i32
    %c0_i32_0 = arith.constant 0 : i32
    %c0_i32_1 = arith.constant 0 : i32
    return %c0_i32, %c0_i32_0 : i32, i32
  }
  func.func @transform_6(%arg0: i32) -> (i32, i32) {
    %c0_i32 = arith.constant 0 : i32
    %c0_i32_0 = arith.constant 0 : i32
    %c0_i32_1 = arith.constant 0 : i32
    return %c0_i32, %c0_i32_0 : i32, i32
  }
  func.func @transform_7(%arg0: i32) -> (i32, i32) {
    %c0_i32 = arith.constant 0 : i32
    %c0_i32_0 = arith.constant 0 : i32
    %c0_i32_1 = arith.constant 0 : i32
    return %c0_i32, %c0_i32_0 : i32, i32
  }
  func.func @transform_8(%arg0: i32) -> (i32, i32) {
    %c0_i32 = arith.constant 0 : i32
    %c0_i32_0 = arith.constant 0 : i32
    %c0_i32_1 = arith.constant 0 : i32
    return %c0_i32, %c0_i32_0 : i32, i32
  }
  func.func @transform_9(%arg0: i32) -> (i32, i32) {
    %c0_i32 = arith.constant 0 : i32
    %c0_i32_0 = arith.constant 0 : i32
    return %arg0, %c0_i32 : i32, i32
  }
}

</mosaic_0001>

<bundles_post_ra>
// kernel: tpu_custom_call.1
= control target key start
LH: loop header
LB: loop body
LE: loop exit
PB: predicated region body
PF: predicated region fallthrough
CT: control target
= control target key end

     0   :  { %14 = vsyncpa [#allocation3], 0  ;;  %s596_s0 = inlined_call_operand.hbm [shape: f32[16,128], index: 0, kind: input, shape index: {}]   ;;  %s597_s1 = inlined_call_operand.hbm [shape: f32[128,128], index: 1, kind: input, shape index: {}]   ;;  %s598_s2 = inlined_call_operand.vmem [shape: f32[1,128], index: 2, kind: input, shape index: {}]   ;;  %s599_s3 = inlined_call_operand.hbm [shape: f32[128,128], index: 3, kind: input, shape index: {}]   ;;  %s600_s4 = inlined_call_operand.vmem [shape: f32[1,128], index: 4, kind: input, shape index: {}]   ;;  %s601_s5 = inlined_call_operand.hbm [shape: f32[128,128], index: 5, kind: input, shape index: {}]   ;;  %s602_s6 = inlined_call_operand.vmem [shape: f32[1,128], index: 6, kind: input, shape index: {}]   ;;  %s603_s7 = inlined_call_operand.hbm [shape: f32[128,128], index: 7, kind: input, shape index: {}]   ;;  %s604_s8 = inlined_call_operand.vmem [shape: f32[1,128], index: 8, kind: input, shape index: {}]   ;;  %s605_s9 = inlined_call_operand.hbm [shape: f32[16,128], index: 9, kind: output, shape index: {}]  }
   0x1   :  { %15 = vsyncpa [#allocation6], 0 }
   0x2   :  { %16 = vsyncpa [#allocation9], 0 }
   0x3   :  { %17 = vsyncpa [#allocation4], 0  ;;  %s35_s11 = sshll.u32 %s597_s1, 4  ;;  %s490_s12 = smov [#allocation5]   ;;  %s36_s11 = int_to_ptr.hbm [resolvable:$true] %s35_s11 }
   0x4   :  { %s37_s13 = sshll.u32 %s490_s12, 4  ;;  %s65_s16 = sshll.u32 %s601_s5, 4  ;;  %s38_s13 = int_to_ptr.vmem [resolvable:$true] %s37_s13  ;;  %s66_s16 = int_to_ptr.hbm [resolvable:$true] %s65_s16 }
   0x5   :  { %s491_s17 = smov 128   ;;  %s492_s18 = smov 8  }
   0x6   :  { %43 = dma.hbm_to_vmem [thread:$0]  %s36_s11, 2048, %s38_s13, [#allocation6], %s491_s17, %s491_s17, %s492_s18  }
   0x7   :  { %s493_s19 = smov [#allocation8]   ;;  %s22_s1 = sshll.u32 %s596_s0, 4  ;;  %s23_s1 = int_to_ptr.hbm [resolvable:$true] %s22_s1 }
   0x8   :  { %s67_s20 = sshll.u32 %s493_s19, 4  ;;  %s50_s24 = sshll.u32 %s599_s3, 4  ;;  %s68_s20 = int_to_ptr.vmem [resolvable:$true] %s67_s20  ;;  %s51_s24 = int_to_ptr.hbm [resolvable:$true] %s50_s24 }
   0x9   :  { %73 = dma.hbm_to_vmem [thread:$0]  %s66_s16, 2048, %s68_s20, [#allocation9], %s491_s17, %s491_s17, %s492_s18  }
   0xa   :  { %s494_s25 = smov [#allocation2]   ;;  %s495_s27 = smov [#allocation7]  }
   0xb   :  { %s24_s26 = sshll.u32 %s494_s25, 4  ;;  %s52_s0 = sshll.u32 %s495_s27, 4  ;;  %s25_s26 = int_to_ptr.vmem [resolvable:$true] %s24_s26  ;;  %s53_s0 = int_to_ptr.vmem [resolvable:$true] %s52_s0 }
   0xc   :  { %30 = dma.hbm_to_vmem [thread:$0]  %s23_s1, 256, %s25_s26, [#allocation3], %s491_s17, %s491_s17, %s492_s18  }
   0xd   :  { %s80_s30 = sshll.u32 %s603_s7, 4  ;;  %s496_s3 = smov [#allocation10]   ;;  %s81_s30 = int_to_ptr.hbm [resolvable:$true] %s80_s30 }
   0xe   :  { %58 = dma.hbm_to_vmem [thread:$0]  %s51_s24, 2048, %s53_s0, [#allocation6], %s491_s17, %s491_s17, %s492_s18  }
   0xf   :  { %s82_s10 = sshll.u32 %s496_s3, 4  ;;  %s83_s10 = int_to_ptr.vmem [resolvable:$true] %s82_s10 }
  0x10   :  { %88 = dma.hbm_to_vmem [thread:$0]  %s81_s30, 2048, %s83_s10, [#allocation9], %s491_s17, %s491_s17, %s492_s18  }
  0x11   :  { %482 = dma.done.wait [#allocation3], 256  }
  0x12   :  { %483 = vsyncadd [#allocation3], 4294967040 }
  0x13   :  { %484 = dma.done.wait [#allocation6], 4096  }
  0x14   :  { %485 = vsyncadd [#allocation6], 4294963200 }
  0x15   :  { %486 = dma.done.wait [#allocation9], 4096  }
  0x16   :  { %487 = vsyncadd [#allocation9], 4294963200  ;;  %v128_v0 = vld [vmem:[#allocation5 + $0x78] sm:$0xff]  ;;  %v127_v1 = vld [vmem:[#allocation5 + $0x70] sm:$0xff]  ;;  %s311_s21 = sshll.u32 %s605_s9, 4  ;;  %s312_s21 = int_to_ptr.hbm [resolvable:$true] %s311_s21 }
  0x17   :  { %133 = vmatpush.msra.mxu0 %v128_v0  ;;  %v126_v2 = vld [vmem:[#allocation5 + $0x68] sm:$0xff]  ;;  %v125_v3 = vld [vmem:[#allocation5 + $0x60] sm:$0xff]  ;;  %v124_v4 = vld [vmem:[#allocation5 + $0x58] sm:$0xff] }
  0x18   :  { %v123_v5 = vld [vmem:[#allocation5 + $0x50] sm:$0xff]  ;;  %v177_v6 = vld [vmem:[#allocation7 + $0x78] sm:$0xff]  ;;  %v122_v8 = vld [vmem:[#allocation5 + $0x48] sm:$0xff] }
  0x19   :  { %134 = vmatpush.msra.mxu0 %v127_v1  ;;  %v176_v7 = vld [vmem:[#allocation7 + $0x70] sm:$0xff]  ;;  %182 = vmatpush.msra.mxu1 %v177_v6  ;;  %v175_v9 = vld [vmem:[#allocation7 + $0x68] sm:$0xff]  ;;  %v121_v10 = vld [vmem:[#allocation5 + $0x40] sm:$0xff] }
  0x1a   :  { %v174_v11 = vld [vmem:[#allocation7 + $0x60] sm:$0xff]  ;;  %v120_v12 = vld [vmem:[#allocation5 + $0x38] sm:$0xff]  ;;  %v119_v14 = vld [vmem:[#allocation5 + $0x30] sm:$0xff] }
  0x1b   :  { %135 = vmatpush.msra.mxu0 %v126_v2  ;;  %183 = vmatpush.msra.mxu1 %v176_v7  ;;  %v173_v13 = vld [vmem:[#allocation7 + $0x58] sm:$0xff]  ;;  %v172_v15 = vld [vmem:[#allocation7 + $0x50] sm:$0xff]  ;;  %v118_v16 = vld [vmem:[#allocation5 + $0x28] sm:$0xff] }
  0x1c   :  { %v171_v17 = vld [vmem:[#allocation7 + $0x48] sm:$0xff]  ;;  %v117_v18 = vld [vmem:[#allocation5 + $0x20] sm:$0xff]  ;;  %v116_v20 = vld [vmem:[#allocation5 + $0x18] sm:$0xff] }
  0x1d   :  { %136 = vmatpush.msra.mxu0 %v125_v3  ;;  %184 = vmatpush.msra.mxu1 %v175_v9  ;;  %v170_v19 = vld [vmem:[#allocation7 + $0x40] sm:$0xff]  ;;  %v169_v21 = vld [vmem:[#allocation7 + $0x38] sm:$0xff]  ;;  %v115_v22 = vld [vmem:[#allocation5 + $0x10] sm:$0xff] }
  0x1e   :  { %v168_v23 = vld [vmem:[#allocation7 + $0x30] sm:$0xff]  ;;  %v114_v24 = vld [vmem:[#allocation5 + $0x8] sm:$0xff]  ;;  %v113_v26 = vld [vmem:[#allocation5] sm:$0xff] }
  0x1f   :  { %137 = vmatpush.msra.mxu0 %v124_v4  ;;  %185 = vmatpush.msra.mxu1 %v174_v11  ;;  %v167_v25 = vld [vmem:[#allocation7 + $0x28] sm:$0xff]  ;;  %v166_v27 = vld [vmem:[#allocation7 + $0x20] sm:$0xff]  ;;  %v111_v28 = vld [vmem:[#allocation2] sm:$0xff] }
  0x20   :  { %v165_v29 = vld [vmem:[#allocation7 + $0x18] sm:$0xff]  ;;  %v164_v31 = vld [vmem:[#allocation7 + $0x10] sm:$0xff]  ;;  %v163_v32 = vld [vmem:[#allocation7 + $0x8] sm:$0xff] }
  0x21   :  { %138 = vmatpush.msra.mxu0 %v123_v5  ;;  %186 = vmatpush.msra.mxu1 %v173_v13  ;;  %v112_v30 = vld [vmem:[#allocation2 + $0x8] sm:$0xff]  ;;  %v162_v33 = vld [vmem:[#allocation7] sm:$0xff]  ;;  %v225_v35 = vld [vmem:[#allocation8 + $0x70] sm:$0xff] }
  0x22   :  { %v226_v34 = vld [vmem:[#allocation8 + $0x78] sm:$0xff]  ;;  %v224_v36 = vld [vmem:[#allocation8 + $0x68] sm:$0xff]  ;;  %v223_v37 = vld [vmem:[#allocation8 + $0x60] sm:$0xff] }
  0x23   :  { %139 = vmatpush.msra.mxu0 %v122_v8  ;;  %187 = vmatpush.msra.mxu1 %v172_v15  ;;  %v222_v38 = vld [vmem:[#allocation8 + $0x58] sm:$0xff]  ;;  %v221_v39 = vld [vmem:[#allocation8 + $0x50] sm:$0xff]  ;;  %v220_v40 = vld [vmem:[#allocation8 + $0x48] sm:$0xff] }
  0x24   :  { %231 = vmatpush.msra.mxu2 %v226_v34  ;;  %v219_v41 = vld [vmem:[#allocation8 + $0x40] sm:$0xff]  ;;  %v218_v42 = vld [vmem:[#allocation8 + $0x38] sm:$0xff]  ;;  %v334_v43 = vld [vmem:[%s598_s2] ss:$0 sm:$0xff] }
  0x25   :  { %140 = vmatpush.msra.mxu0 %v121_v10  ;;  %188 = vmatpush.msra.mxu1 %v171_v17  ;;  %v217_v44 = vld [vmem:[#allocation8 + $0x30] sm:$0xff]  ;;  %v216_v46 = vld [vmem:[#allocation8 + $0x28] sm:$0xff]  ;;  %v215_v48 = vld [vmem:[#allocation8 + $0x20] sm:$0xff] }
  0x26   :  { %232 = vmatpush.msra.mxu2 %v225_v35  ;;  %v214_v50 = vld [vmem:[#allocation8 + $0x18] sm:$0xff]  ;;  %v213_v56 = vld [vmem:[#allocation8 + $0x10] sm:$0xff]  ;;  %v212_v57 = vld [vmem:[#allocation8 + $0x8] sm:$0xff] }
  0x27   :  { %141 = vmatpush.msra.mxu0 %v120_v12  ;;  %189 = vmatpush.msra.mxu1 %v170_v19  ;;  %v211_v58 = vld [vmem:[#allocation8] sm:$0xff]  ;;  %v275_v59 = vld [vmem:[#allocation10 + $0x78] sm:$0xff]  ;;  %v274_v60 = vld [vmem:[#allocation10 + $0x70] sm:$0xff] }
  0x28   :  { %233 = vmatpush.msra.mxu2 %v224_v36  ;;  %280 = vmatpush.msra.mxu3 %v275_v59  ;;  %v273_v61 = vld [vmem:[#allocation10 + $0x68] sm:$0xff]  ;;  %v272_v62 = vld [vmem:[#allocation10 + $0x60] sm:$0xff]  ;;  %v271_v63 = vld [vmem:[#allocation10 + $0x58] sm:$0xff] }
  0x29   :  { %142 = vmatpush.msra.mxu0 %v119_v14  ;;  %190 = vmatpush.msra.mxu1 %v169_v21  ;;  %v270_v0 = vld [vmem:[#allocation10 + $0x50] sm:$0xff]  ;;  %v269_v1 = vld [vmem:[#allocation10 + $0x48] sm:$0xff]  ;;  %v268_v2 = vld [vmem:[#allocation10 + $0x40] sm:$0xff] }
  0x2a   :  { %234 = vmatpush.msra.mxu2 %v223_v37  ;;  %281 = vmatpush.msra.mxu3 %v274_v60  ;;  %v267_v3 = vld [vmem:[#allocation10 + $0x38] sm:$0xff]  ;;  %v335_v4 = vld [vmem:[%s600_s4] ss:$0 sm:$0xff]  ;;  %v265_v7 = vld [vmem:[#allocation10 + $0x28] sm:$0xff] }
  0x2b   :  { %143 = vmatpush.msra.mxu0 %v118_v16  ;;  %191 = vmatpush.msra.mxu1 %v168_v23  ;;  %v266_v5 = vld [vmem:[#allocation10 + $0x30] sm:$0xff]  ;;  %v264_v9 = vld [vmem:[#allocation10 + $0x20] sm:$0xff]  ;;  %v263_v11 = vld [vmem:[#allocation10 + $0x18] sm:$0xff] }
  0x2c   :  { %235 = vmatpush.msra.mxu2 %v222_v38  ;;  %282 = vmatpush.msra.mxu3 %v273_v61  ;;  %v262_v17 = vld [vmem:[#allocation10 + $0x10] sm:$0xff]  ;;  %v260_v19 = vld [vmem:[#allocation10] sm:$0xff] }
  0x2d   :  { %144 = vmatpush.msra.mxu0 %v117_v18  ;;  %192 = vmatpush.msra.mxu1 %v167_v25  ;;  %v261_v18 = vld [vmem:[#allocation10 + $0x8] sm:$0xff] }
  0x2e   :  { %236 = vmatpush.msra.mxu2 %v221_v39  ;;  %283 = vmatpush.msra.mxu3 %v272_v62 }
  0x2f   :  { %145 = vmatpush.msra.mxu0 %v116_v20  ;;  %193 = vmatpush.msra.mxu1 %v166_v27  ;;  %v336_v20 = vld [vmem:[%s602_s6] ss:$0 sm:$0xff]  ;;  %s497_s6 = smov [#allocation11]  }
  0x30   :  { %237 = vmatpush.msra.mxu2 %v220_v40  ;;  %284 = vmatpush.msra.mxu3 %v271_v63  ;;  %s309_s16 = sshll.u32 %s497_s6, 4  ;;  %s310_s16 = int_to_ptr.vmem [resolvable:$true] %s309_s16 }
  0x31   :  { %146 = vmatpush.msra.mxu0 %v115_v22  ;;  %194 = vmatpush.msra.mxu1 %v165_v29  ;;  %v337_v29 = vld [vmem:[%s604_s8] ss:$0 sm:$0xff] }
  0x32   :  { %238 = vmatpush.msra.mxu2 %v219_v41  ;;  %285 = vmatpush.msra.mxu3 %v270_v0 }
  0x33   :  { %147 = vmatpush.msra.mxu0 %v114_v24  ;;  %195 = vmatpush.msra.mxu1 %v164_v31 }
  0x34   :  { %239 = vmatpush.msra.mxu2 %v218_v42  ;;  %286 = vmatpush.msra.mxu3 %v269_v1 }
  0x35   :  { %148 = vmatpush.msra.mxu0 %v113_v26  ;;  %196 = vmatpush.msra.mxu1 %v163_v32 }
  0x36   :  { %149 = vmatmul.f32.vlgmr.msra.gmra.mxu0 %v111_v28  ;;  %240 = vmatpush.msra.mxu2 %v217_v44 }
  0x37   :  { %197 = vmatpush.msra.mxu1 %v162_v33  ;;  %287 = vmatpush.msra.mxu3 %v268_v2 }
  0x38   :  { %241 = vmatpush.msra.mxu2 %v216_v46 }
  0x39   :  { %288 = vmatpush.msra.mxu3 %v267_v3 }
  0x3a   :  { %242 = vmatpush.msra.mxu2 %v215_v48 }
  0x3b   :  { %289 = vmatpush.msra.mxu3 %v266_v5 }
  0x3c   :  { %243 = vmatpush.msra.mxu2 %v214_v50 }
  0x3d   :  { %290 = vmatpush.msra.mxu3 %v265_v7 }
  0x3e   :  { %152 = vmatmul.f32.gmra.mxu0 %v112_v30  ;;  %244 = vmatpush.msra.mxu2 %v213_v56 }
  0x3f   :  { %291 = vmatpush.msra.mxu3 %v264_v9 }
  0x40   :  { %245 = vmatpush.msra.mxu2 %v212_v57 }
  0x41   :  { %292 = vmatpush.msra.mxu3 %v263_v11 }
  0x42   :  { %246 = vmatpush.msra.mxu2 %v211_v58 }
  0x43   :  { %293 = vmatpush.msra.mxu3 %v262_v17 }
  0x45   :  { %294 = vmatpush.msra.mxu3 %v261_v18 }
  0x47   :  { %295 = vmatpush.msra.mxu3 %v260_v19 }
  0xb3   :  { %v150_v45 = vpop.f32.mrf.mxu0 }
  0xb4   :  { %v151_v47 = vadd.f32 %v334_v43, %v150_v45 }
  0xb6   :  { %vm156_vm0 = vcmp.gt.f32.partialorder %v151_v47, 0.0  ;;  %v158_v49 = vmul.f32 0.01, %v151_v47 }
  0xb8   :  { %v160_v51 = vsel %vm156_vm0, %v151_v47, %v158_v49 }
  0xb9   :  { %198 = vmatmul.f32.vlgmr.msra.gmra.mxu1 %v160_v51 }
  0xbb   :  { %v153_v52 = vpop.f32.mrf.mxu0 }
  0xbc   :  { %v154_v53 = vadd.f32 %v334_v43, %v153_v52 }
  0xbe   :  { %vm157_vm1 = vcmp.gt.f32.partialorder %v154_v53, 0.0  ;;  %v159_v54 = vmul.f32 0.01, %v154_v53 }
  0xc0   :  { %v161_v55 = vsel %vm157_vm1, %v154_v53, %v159_v54 }
  0xc1   :  { %201 = vmatmul.f32.gmra.mxu1 %v161_v55 }
 0x136   :  { %v199_v6 = vpop.f32.mrf.mxu1 }
 0x137   :  { %v200_v8 = vadd.f32 %v335_v4, %v199_v6 }
 0x139   :  { %vm205_vm2 = vcmp.gt.f32.partialorder %v200_v8, 0.0  ;;  %v207_v10 = vmul.f32 0.01, %v200_v8 }
 0x13b   :  { %v209_v12 = vsel %vm205_vm2, %v200_v8, %v207_v10 }
 0x13c   :  { %247 = vmatmul.f32.vlgmr.msra.gmra.mxu2 %v209_v12 }
 0x13e   :  { %v202_v13 = vpop.f32.mrf.mxu1 }
 0x13f   :  { %v203_v14 = vadd.f32 %v335_v4, %v202_v13 }
 0x141   :  { %vm206_vm3 = vcmp.gt.f32.partialorder %v203_v14, 0.0  ;;  %v208_v15 = vmul.f32 0.01, %v203_v14 }
 0x143   :  { %v210_v16 = vsel %vm206_vm3, %v203_v14, %v208_v15 }
 0x144   :  { %250 = vmatmul.f32.gmra.mxu2 %v210_v16 }
 0x1bf   :  { %v248_v21 = vpop.f32.mrf.mxu2 }
 0x1c0   :  { %v249_v22 = vadd.f32 %v336_v20, %v248_v21 }
 0x1c2   :  { %vm254_vm4 = vcmp.gt.f32.partialorder %v249_v22, 0.0  ;;  %v256_v23 = vmul.f32 0.01, %v249_v22 }
 0x1c4   :  { %v258_v24 = vsel %vm254_vm4, %v249_v22, %v256_v23 }
 0x1c5   :  { %296 = vmatmul.f32.vlgmr.msra.gmra.mxu3 %v258_v24 }
 0x1c7   :  { %v251_v25 = vpop.f32.mrf.mxu2 }
 0x1c8   :  { %v252_v26 = vadd.f32 %v336_v20, %v251_v25 }
 0x1ca   :  { %vm255_vm5 = vcmp.gt.f32.partialorder %v252_v26, 0.0  ;;  %v257_v27 = vmul.f32 0.01, %v252_v26 }
 0x1cc   :  { %v259_v28 = vsel %vm255_vm5, %v252_v26, %v257_v27 }
 0x1cd   :  { %299 = vmatmul.f32.gmra.mxu3 %v259_v28 }
 0x248   :  { %v297_v30 = vpop.f32.mrf.mxu3 }
 0x249   :  { %v298_v31 = vadd.f32 %v337_v29, %v297_v30 }
 0x24b   :  { %303 = vst [vmem:[#allocation11] sm:$0xff] %v298_v31 }
 0x250   :  { %v300_v32 = vpop.f32.mrf.mxu3 }
 0x251   :  { %v301_v33 = vadd.f32 %v337_v29, %v300_v32 }
 0x253   :  { %304 = vst [vmem:[#allocation11 + $0x8] sm:$0xff] %v301_v33 }
 0x254   :  { %317 = dma.vmem_to_hbm [thread:$0]  %s310_s16, 256, %s312_s21, [#allocation4], %s491_s17, %s491_s17, %s492_s18  }
 0x255   :  { %488 = dma.done.wait [#allocation4], 256  }
 0x256   :  { %489 = vsyncadd [#allocation4], 4294967040 }
 0x257   :  { %322 = vsyncpa [#allocation3], 1 }
 0x258   :  { %323 = vsyncpa [#allocation6], 1 }
 0x259   :  { %324 = vsyncpa [#allocation9], 1 }
 0x25a   :  { %325 = vsyncpa [#allocation4], 1 }

</bundles_post_ra>
